<compile_context>
chip_gen: v5e
topology: v5e:2x2
jax: 0.10.0
libtpu: 0.0.40
codegen_flags: <defaults>
</compile_context>

<pallas_src>
import numpy as np
import jax
import jax.numpy as jnp
from jax import lax
from jax.experimental import pallas as pl
from jax.experimental.pallas import tpu as pltpu


# ----------------------------------------------------------------------------
# Mask generation (faithful numpy port of generate_multi_direction_mask)
# ----------------------------------------------------------------------------
def generate_multi_direction_mask(w, h):
    cx = (w + 1) // 4
    cy = (h + 1) // 4
    index_x = [np.arange(w)[k:k + cx] for k in range(0, w, cx)]
    index_y = [np.arange(h)[k:k + cy] for k in range(0, h, cy)]
    square = np.zeros((4, 4, h, w), np.float32)
    for i in range(4):
        for j in range(4):
            for x in index_x[i]:
                for y in index_y[j]:
                    square[i, j, y, x] = 1.0
    group_x = [[0, 0, 1], [1], [2, 3, 3], [2], [0, 0, 1], [1], [2, 3, 3], [2]]
    group_y = [[1, 0, 0], [1], [0, 0, 1], [1], [2, 3, 3], [2], [3, 3, 2], [2]]
    mask = np.zeros((8, h, w), np.float32)
    for i in range(8):
        m = np.zeros((h, w), np.float32)
        for gx, gy in zip(group_x[i], group_y[i]):
            m = m + square[gx, gy]
        mask[i] = np.clip(m, 0.0, 1.0)
    return mask


def build_sal_index_table(sal_mask):
    """Precompute gather indices reproducing s[:, :, mask>0] (row-major) followed by
    F.adaptive_max_pool1d(output_size=target). Groups shorter than kmax are padded by
    repeating the last index, which is exact under a max reduction."""
    P, H, W = sal_mask.shape
    flat = sal_mask.reshape(P, -1)
    counts = (flat > 0).sum(axis=1)
    target = int(counts.min())
    groups, kmax = [], 1
    for i in range(P):
        nz = np.nonzero(flat[i] > 0)[0]
        L = len(nz)
        if L > target:
            gi = []
            for t in range(target):
                lo = (t * L) // target
                hi = -((-(t + 1) * L) // target)  # ceil((t+1)*L/target)
                gi.append(nz[lo:hi])
        else:
            gi = [nz[t:t + 1] for t in range(target)]
        kmax = max(kmax, max(len(g) for g in gi))
        groups.append(gi)
    idx = np.zeros((P, target, kmax), np.int32)
    for i in range(P):
        for t in range(target):
            g = groups[i][t]
            idx[i, t] = np.concatenate(
                [g, np.full(kmax - len(g), g[-1], dtype=g.dtype)])
    return idx, target, kmax


# ----------------------------------------------------------------------------
# Small helpers
# ----------------------------------------------------------------------------
def _cdiv(a, b):
    return -(-a // b)


def _round_up(v, m):
    return ((v + m - 1) // m) * m


def _detect_num_tensorcores():
    # Perf-only heuristic: v7x has 2 TensorCores per chip that ("parallel",) grid axes
    # shard across; v5e/v6e have 1.  Detection failure is harmless (falls back to 1).
    try:
        kind = jax.devices()[0].device_kind.lower()
    except Exception:
        return 1
    return 2 if ("v7" in kind or "tpu7" in kind) else 1


# ----------------------------------------------------------------------------
# Pallas kernels
# ----------------------------------------------------------------------------
def _feat_block(x_ref, mask_ref, inv_ref):
    # mask_ref: (8, HW) exact 0/1 in x.dtype; x_ref: (TM, HW) in x.dtype (bf16 feeds the
    # MXU natively — no VPU upcast).  Contract on HW -> lane-dense (8, TM) f32
    # accumulator, then the per-pattern 1/count scale in f32.
    acc = lax.dot_general(
        mask_ref[...], x_ref[...],
        dimension_numbers=(((1,), (1,)), ((), ())),
        preferred_element_type=jnp.float32)
    return acc * inv_ref[...]                      # (8, TM) * (8, 1) f32


def _feat_kernel(x_ref, mask_ref, inv_ref, o_ref):
    o_ref[...] = _feat_block(x_ref, mask_ref, inv_ref).astype(o_ref.dtype)


def _fused_kernel(x_ref, mask_ref, inv_ref, g_ref, feat_ref, sal_ref):
    # Whole forward in one launch (used when feat fits a single tile).
    feat_ref[...] = _feat_block(x_ref, mask_ref, inv_ref).astype(feat_ref.dtype)
    g = g_ref[...]                                  # (B, K, lanes) — single input slab
    m = g[:, 0, :]
    for k in range(1, g.shape[1]):                  # unrolled K-way elementwise max (VPU)
        m = jnp.maximum(m, g[:, k, :])
    sal_ref[...] = m.astype(sal_ref.dtype)


# ----------------------------------------------------------------------------
# Module wrapper
# ----------------------------------------------------------------------------
class MultiRectanglePatternPallas:

    def __init__(self, num_tensorcores=None, max_tile_rows=8192):
        # max_tile_rows=8192 -> an (8192, 49) f32 x-tile is ~1.6 MiB (~3.2 MiB double
        # buffered), far under the scoped-VMEM default on every TPU generation.
        self.feat_mask = generate_multi_direction_mask(7, 7)     # (8, 7, 7) numpy 0/1
        self.sal_mask = generate_multi_direction_mask(56, 56)    # (8, 56, 56) numpy 0/1

        fm = self.feat_mask.reshape(8, -1)                        # (8, 49) 0/1
        self._fm_flat = fm
        cnt = (fm > 0).sum(axis=1).astype(np.float32)             # (8,)
        self._inv_count = jnp.asarray((1.0 / cnt).reshape(8, 1))  # f32 post-scale

        idx, self.target, self.kmax = build_sal_index_table(self.sal_mask)
        self.P = idx.shape[0]
        self.lanes = self.P * self.target                          # 1568, lane-dense
        # Single (K, T*P) table -> one gather HLO -> one kernel input slab.  Lane order
        # is (t, p) so pooled.reshape(B, T, 2, 4) needs no post-kernel transpose.
        idx_tp = np.transpose(idx, (1, 0, 2))                      # (T, P, K)
        self._sal_idx = jnp.asarray(
            np.transpose(idx_tp, (2, 0, 1)).reshape(self.kmax, -1))  # (K, T*P) int32

        self.ncores = (num_tensorcores if num_tensorcores is not None
                       else _detect_num_tensorcores())
        self.max_tile_rows = int(max_tile_rows)

        self._fwd_xs = jax.jit(self._forward)
        self._fwd_x = jax.jit(self._forward_feat_only)

    # ---- tiling: core-count aware, no padding (grid = cdiv) ------------------
    def _tiling(self, bc):
        if self.ncores >= 2 and bc > 256:
            # v7x: even step count so both TensorCores get equal work.
            steps = 2 * max(1, _cdiv(bc, 2 * self.max_tile_rows))
            tm = _round_up(_cdiv(bc, steps), 128)
        elif bc <= self.max_tile_rows:
            return bc, 1                       # single block: block dims == array dims
        else:
            # single-TC chips: fewest big tiles (per-step overhead is pure loss here).
            steps = _cdiv(bc, self.max_tile_rows)
            tm = _round_up(_cdiv(bc, steps), 128)
        return tm, _cdiv(bc, tm)

    # ---- feat-only pallas_call (also the feat half of the split path) --------
    def _feat_pallas_call(self, x2, mask, BC, HW, TM, grid, out_dtype):
        isz = x2.dtype.itemsize
        ce = pl.CostEstimate(
            flops=2 * 8 * HW * BC,
            transcendentals=0,
            bytes_accessed=BC * HW * isz + 8 * HW * isz + 8 * 4 + 8 * BC * isz)
        return pl.pallas_call(
            _feat_kernel,
            out_shape=jax.ShapeDtypeStruct((8, BC), out_dtype),
            grid=(grid,),
            in_specs=[pl.BlockSpec((TM, HW), lambda i: (i, 0)),
                      pl.BlockSpec((8, HW), lambda i: (0, 0)),
                      pl.BlockSpec((8, 1), lambda i: (0, 0))],
            out_specs=pl.BlockSpec((8, TM), lambda i: (0, i)),   # lane-dense output
            compiler_params=pltpu.CompilerParams(
                dimension_semantics=("parallel",) if grid > 1 else ("arbitrary",)),
            cost_estimate=ce,
        )(x2, mask, self._inv_count)

    # ---- full forward (feat + sal) -------------------------------------------
    def _forward(self, x, s):
        B, C, H, W = x.shape
        HW, BC = H * W, B * C
        TM, grid = self._tiling(BC)
        x2 = x.reshape(BC, HW)                                    # no pad: grid = cdiv
        mask = jnp.asarray(self._fm_flat, dtype=x.dtype)          # exact 0/1 in x.dtype
        # Single static-index gather (indices derive from the constant sal_mask);
        # one (B, K, lanes) slab instead of K separate gathers / DMA streams.
        # TODO(synk): move this gather in-kernel once Mosaic supports a general
        # lane-axis gather; it cannot be expressed as a rectangular BlockSpec window.
        g = jnp.take(s.reshape(B, -1), self._sal_idx, axis=1)     # (B, K, lanes)

        x_isz = x.dtype.itemsize
        s_isz = s.dtype.itemsize
        feat_bytes = BC * HW * x_isz + 8 * HW * x_isz + 8 * 4 + 8 * BC * x_isz

        if grid == 1:
            # Whole forward = one kernel launch.
            ce = pl.CostEstimate(
                flops=2 * 8 * HW * BC + B * self.lanes * (self.kmax - 1),
                transcendentals=0,
                bytes_accessed=feat_bytes + (self.kmax + 1) * B * self.lanes * s_isz)
            feat8, pooled = pl.pallas_call(
                _fused_kernel,
                out_shape=(jax.ShapeDtypeStruct((8, BC), x.dtype),
                           jax.ShapeDtypeStruct((B, self.lanes), s.dtype)),
                grid=(1,),
                in_specs=[pl.BlockSpec((BC, HW), lambda i: (0, 0)),
                          pl.BlockSpec((8, HW), lambda i: (0, 0)),
                          pl.BlockSpec((8, 1), lambda i: (0, 0)),
                          pl.BlockSpec((B, self.kmax, self.lanes),
                                       lambda i: (0, 0, 0))],
                out_specs=(pl.BlockSpec((8, BC), lambda i: (0, 0)),
                           pl.BlockSpec((B, self.lanes), lambda i: (0, 0))),
                compiler_params=pltpu.CompilerParams(
                    dimension_semantics=("arbitrary",)),
                cost_estimate=ce,
            )(x2, mask, self._inv_count, g)
        else:
            feat8 = self._feat_pallas_call(x2, mask, BC, HW, TM, grid, x.dtype)
            # KB-scale K-way max: done in XLA right on top of the gather (fuses with
            # it); a standalone Pallas launch would cost more than its VPU work.
            pooled = jnp.max(g, axis=1)                            # (B, lanes)

        # Tiny (8, BC) slab back to the reference (B, C, 2, 4) layout; kept because the
        # consumer expects the PyTorch layout (single small copy, fused by XLA).
        feat = feat8.T.reshape(B, C, 2, 4)
        sal_feat = pooled.reshape(B, self.target, 2, 4)
        return feat, sal_feat

    # ---- feat-only forward (s is None) ----------------------------------------
    def _forward_feat_only(self, x):
        B, C, H, W = x.shape
        HW, BC = H * W, B * C
        TM, grid = self._tiling(BC)
        x2 = x.reshape(BC, HW)
        mask = jnp.asarray(self._fm_flat, dtype=x.dtype)
        feat8 = self._feat_pallas_call(x2, mask, BC, HW, TM, grid, x.dtype)
        return feat8.T.reshape(B, C, 2, 4)

    def __call__(self, x, s=None):
        if s is None:
            return self._fwd_x(x)
        return self._fwd_xs(x, s)


# ----------------------------------------------------------------------------
# Pure-numpy reference (mirrors the PyTorch forward) for a correctness check
# ----------------------------------------------------------------------------
def _reference_forward(feat_mask, sal_mask, x, s):
    x = np.asarray(x, np.float64)
    s = np.asarray(s, np.float64)
    mask = feat_mask[None, None]                                   # (1,1,8,7,7)
    count = (mask.reshape(1, 1, 8, -1) > 0).sum(-1)                # (1,1,8)
    part = (x[:, :, None] * mask).sum(-1).sum(-1)                  # (B,C,8)
    feat = (part / count).reshape(x.shape[0], x.shape[1], 2, 4)

    flat = sal_mask.reshape(8, -1)
    counts = (flat > 0).sum(-1)
    target = int(counts.min())
    B = s.shape[0]
    s_flat = s.reshape(B, -1)
    sal_list = []
    for i in range(8):
        nz = np.nonzero(flat[i] > 0)[0]
        sal = s_flat[:, nz]
        L = sal.shape[1]
        if L > target:
            pooled = np.empty((B, target))
            for t in range(target):
                lo = (t * L) // target
                hi = -((-(t + 1) * L) // target)
                pooled[:, t] = sal[:, lo:hi].max(-1)
            sal = pooled
        sal_list.append(sal)
    sal_feat = np.stack(sal_list, axis=2).reshape(B, target, 2, 4)
    return feat, sal_feat


if __name__ == "__main__":
    key = jax.random.PRNGKey(0)
    kx, ks, kx2, ks2, kx3, ks3 = jax.random.split(key, 6)
    mod = MultiRectanglePatternPallas()

    # 1) Micro case, f32: whole forward is a single fused kernel launch.
    B, C = 2, 4
    x = jax.random.normal(kx, (B, C, 7, 7), dtype=jnp.float32)
    s = jax.random.uniform(ks, (B, 1, 56, 56), dtype=jnp.float32)
    feat, sal_feat = mod(x, s)
    jax.block_until_ready((feat, sal_feat))
    assert feat.shape == (B, C, 2, 4), feat.shape
    assert sal_feat.shape == (B, mod.target, 2, 4), sal_feat.shape
    ref_feat, ref_sal = _reference_forward(mod.feat_mask, mod.sal_mask,
                                           np.asarray(x), np.asarray(s))
    np.testing.assert_allclose(np.asarray(feat), ref_feat, rtol=1e-5, atol=1e-5)
    np.testing.assert_allclose(np.asarray(sal_feat), ref_sal, rtol=1e-5, atol=1e-5)

    # feat-only (s is None) path.
    feat_only = mod(x)
    jax.block_until_ready(feat_only)
    np.testing.assert_allclose(np.asarray(feat_only), ref_feat, rtol=1e-5, atol=1e-5)

    # 2) Micro case, bf16: exercises the native bf16 MXU path (mask kept exact 0/1 in
    #    bf16, no in-kernel upcast; 1/count applied in f32 on the accumulator).
    xb = jax.random.normal(kx2, (B, C, 7, 7), dtype=jnp.bfloat16)
    sb = jax.random.uniform(ks2, (B, 1, 56, 56), dtype=jnp.bfloat16)
    featb, salb = mod(xb, sb)
    jax.block_until_ready((featb, salb))
    ref_featb, ref_salb = _reference_forward(
        mod.feat_mask, mod.sal_mask,
        np.asarray(xb.astype(jnp.float32)), np.asarray(sb.astype(jnp.float32)))
    np.testing.assert_allclose(np.asarray(featb.astype(jnp.float32)), ref_featb,
                               rtol=2e-2, atol=2e-2)
    np.testing.assert_allclose(np.asarray(salb.astype(jnp.float32)), ref_salb,
                               rtol=2e-2, atol=2e-2)

    # 3) Larger, non-tile-divisible case with a forced small tile cap so the no-pad
    #    cdiv-gridded feat kernel (partial last block, lane-clipped writeback) and the
    #    split sal path run regardless of which TPU generation executes this script.
    mod_tiled = MultiRectanglePatternPallas(num_tensorcores=1, max_tile_rows=1024)
    B3, C3 = 2, 1537                                  # B*C = 3074 (not a multiple of 128)
    x3 = jax.random.normal(kx3, (B3, C3, 7, 7), dtype=jnp.float32)
    s3 = jax.random.uniform(ks3, (B3, 1, 56, 56), dtype=jnp.float32)
    feat3, sal3 = mod_tiled(x3, s3)
    jax.block_until_ready((feat3, sal3))
    ref_feat3, ref_sal3 = _reference_forward(mod_tiled.feat_mask, mod_tiled.sal_mask,
                                             np.asarray(x3), np.asarray(s3))
    np.testing.assert_allclose(np.asarray(feat3), ref_feat3, rtol=1e-5, atol=1e-5)
    np.testing.assert_allclose(np.asarray(sal3), ref_sal3, rtol=1e-5, atol=1e-5)

    print("KERNEL_OK")
</pallas_src>

<mosaic_0001>
module attributes {stable_mosaic.version = 11 : i64} {
  func.func @_fused_kernel(%arg0: i32, %arg1: memref<8x49xf32, #tpu.memory_space<vmem>>, %arg2: memref<8x49xf32, #tpu.memory_space<vmem>>, %arg3: memref<8x1xf32, #tpu.memory_space<vmem>>, %arg4: memref<2x3x1568xf32, #tpu.memory_space<vmem>>, %arg5: memref<8x8xf32, #tpu.memory_space<vmem>>, %arg6: memref<2x1568xf32, #tpu.memory_space<vmem>>) attributes {dimension_semantics = [#tpu.dimension_semantics<arbitrary>], iteration_bounds = array<i64: 1>, scalar_prefetch = 0 : i64, scratch_operands = 0 : i64, tpu.core_type = #tpu.core_type<tc>, window_params = [{pipeline_mode = #tpu.pipeline_mode<synchronous>, transform_indices = @transform_0, window_bounds = array<i64: 8, 49>}, {pipeline_mode = #tpu.pipeline_mode<synchronous>, transform_indices = @transform_1, window_bounds = array<i64: 8, 49>}, {pipeline_mode = #tpu.pipeline_mode<synchronous>, transform_indices = @transform_2, window_bounds = array<i64: 8, 1>}, {pipeline_mode = #tpu.pipeline_mode<synchronous>, transform_indices = @transform_3, window_bounds = array<i64: 2, 3, 1568>}, {pipeline_mode = #tpu.pipeline_mode<synchronous>, transform_indices = @transform_4, window_bounds = array<i64: 8, 8>}, {pipeline_mode = #tpu.pipeline_mode<synchronous>, transform_indices = @transform_5, window_bounds = array<i64: 2, 1568>}]} {
    %c0 = arith.constant 0 : index
    %c0_0 = arith.constant 0 : index
    %0 = vector.load %arg2[%c0, %c0_0] : memref<8x49xf32, #tpu.memory_space<vmem>>, vector<8x49xf32>
    %c0_1 = arith.constant 0 : index
    %c0_2 = arith.constant 0 : index
    %1 = vector.load %arg1[%c0_1, %c0_2] : memref<8x49xf32, #tpu.memory_space<vmem>>, vector<8x49xf32>
    %cst = arith.constant dense<0.000000e+00> : vector<8x8xf32>
    %2 = tpu.matmul %0, %1, %cst {dimension_numbers = #tpu.dot_dimension_numbers<[1], [1], [0], [0], [0, 0, 1, 0], [], []>} : vector<8x49xf32>, vector<8x49xf32>, vector<8x8xf32> -> vector<8x8xf32>
    %c0_3 = arith.constant 0 : index
    %c0_4 = arith.constant 0 : index
    %3 = vector.load %arg3[%c0_3, %c0_4] : memref<8x1xf32, #tpu.memory_space<vmem>>, vector<8x1xf32>
    %4 = vector.broadcast %3 : vector<8x1xf32> to vector<8x8xf32>
    %5 = arith.mulf %2, %4 : vector<8x8xf32>
    %c0_5 = arith.constant 0 : index
    %c0_6 = arith.constant 0 : index
    %6 = vector.load %arg5[%c0_5, %c0_6] : memref<8x8xf32, #tpu.memory_space<vmem>>, vector<8x8xf32>
    tpu.vector_store %arg5[%c0_5, %c0_6], %5 {strides = array<i32>} : memref<8x8xf32, #tpu.memory_space<vmem>>, vector<8x8xf32>,
    %c0_7 = arith.constant 0 : index
    %c0_8 = arith.constant 0 : index
    %c0_9 = arith.constant 0 : index
    %7 = vector.load %arg4[%c0_7, %c0_8, %c0_9] : memref<2x3x1568xf32, #tpu.memory_space<vmem>>, vector<2x3x1568xf32>
    %8 = vector.extract_strided_slice %7 {offsets = [0, 0, 0], sizes = [2, 1, 1568], strides = [1, 1, 1]} : vector<2x3x1568xf32> to vector<2x1x1568xf32>
    %9 = vector.shape_cast %8 : vector<2x1x1568xf32> to vector<2x1568xf32>
    %10 = vector.extract_strided_slice %7 {offsets = [0, 1, 0], sizes = [2, 1, 1568], strides = [1, 1, 1]} : vector<2x3x1568xf32> to vector<2x1x1568xf32>
    %11 = vector.shape_cast %10 : vector<2x1x1568xf32> to vector<2x1568xf32>
    %12 = arith.maximumf %9, %11 : vector<2x1568xf32>
    %13 = vector.extract_strided_slice %7 {offsets = [0, 2, 0], sizes = [2, 1, 1568], strides = [1, 1, 1]} : vector<2x3x1568xf32> to vector<2x1x1568xf32>
    %14 = vector.shape_cast %13 : vector<2x1x1568xf32> to vector<2x1568xf32>
    %15 = arith.maximumf %12, %14 : vector<2x1568xf32>
    %c0_10 = arith.constant 0 : index
    %c0_11 = arith.constant 0 : index
    %16 = vector.load %arg6[%c0_10, %c0_11] : memref<2x1568xf32, #tpu.memory_space<vmem>>, vector<2x1568xf32>
    tpu.vector_store %arg6[%c0_10, %c0_11], %15 {strides = array<i32>} : memref<2x1568xf32, #tpu.memory_space<vmem>>, vector<2x1568xf32>,
    return
  }
  func.func @transform_0(%arg0: i32) -> (i32, i32) {
    %c0_i32 = arith.constant 0 : i32
    %c0_i32_0 = arith.constant 0 : i32
    %c0_i32_1 = arith.constant 0 : i32
    return %c0_i32, %c0_i32_0 : i32, i32
  }
  func.func @transform_1(%arg0: i32) -> (i32, i32) {
    %c0_i32 = arith.constant 0 : i32
    %c0_i32_0 = arith.constant 0 : i32
    %c0_i32_1 = arith.constant 0 : i32
    return %c0_i32, %c0_i32_0 : i32, i32
  }
  func.func @transform_2(%arg0: i32) -> (i32, i32) {
    %c0_i32 = arith.constant 0 : i32
    %c0_i32_0 = arith.constant 0 : i32
    %c0_i32_1 = arith.constant 0 : i32
    return %c0_i32, %c0_i32_0 : i32, i32
  }
  func.func @transform_3(%arg0: i32) -> (i32, i32, i32) {
    %c0_i32 = arith.constant 0 : i32
    %c0_i32_0 = arith.constant 0 : i32
    %c0_i32_1 = arith.constant 0 : i32
    %c0_i32_2 = arith.constant 0 : i32
    return %c0_i32, %c0_i32_0, %c0_i32_1 : i32, i32, i32
  }
  func.func @transform_4(%arg0: i32) -> (i32, i32) {
    %c0_i32 = arith.constant 0 : i32
    %c0_i32_0 = arith.constant 0 : i32
    %c0_i32_1 = arith.constant 0 : i32
    return %c0_i32, %c0_i32_0 : i32, i32
  }
  func.func @transform_5(%arg0: i32) -> (i32, i32) {
    %c0_i32 = arith.constant 0 : i32
    %c0_i32_0 = arith.constant 0 : i32
    %c0_i32_1 = arith.constant 0 : i32
    return %c0_i32, %c0_i32_0 : i32, i32
  }
}

</mosaic_0001>

<bundles_post_ra>
// kernel: _forward.1
= control target key start
LH: loop header
LB: loop body
LE: loop exit
PB: predicated region body
PF: predicated region fallthrough
CT: control target
= control target key end

     0   :  { %vm21_vm0 = vcmask 400384   ;;  %v337_v1 = vmov 0   ;;  %vm231_vm1 = vcmask 1041408   ;;  %vm233_vm2 = vcmask 1045508   ;;  %s481_s0 = inlined_call_operand.vmem [shape: f32[8,49], index: 0, kind: input, shape index: {}]   ;;  %s482_s1 = inlined_call_operand.vmem [shape: f32[8,49], index: 1, kind: input, shape index: {}]   ;;  %s483_s2 = inlined_call_operand.vmem [shape: f32[8,1], index: 2, kind: input, shape index: {}]   ;;  %s484_s3 = inlined_call_operand.vmem [shape: f32[2,3,1568], index: 3, kind: input, shape index: {}]   ;;  %s485_s5 = inlined_call_operand.vmem [shape: f32[2,1568], index: 5, kind: output, shape index: {1}]   ;;  %s486_s4 = inlined_call_operand.vmem [shape: f32[8,8], index: 4, kind: output, shape index: {0}]  }
   0x1   :  { %v20_v0 = vld [vmem:[%s481_s0] sm:$0xff]  ;;  %336 = vset.pattern.permute.xlu0 %v337_v1  ;;  %v380_v4 = vld [vmem:[%s484_s3 + $0x34] sm:$0x77]  ;;  %v58_v8 = vld [vmem:[%s484_s3 + $0x8] sm:$0x77]  ;;  %vm235_vm3 = vcmask 1043456  }
   0x2   :  { %v48_v2 = vld [vmem:[%s483_s2] sm:$0xff]  ;;  %305 = vmatpush.xpose.msk.msra.mxu0 %vm21_vm0, %v20_v0  ;;  %v59_v9 = vld [vmem:[%s484_s3 + $0x10] sm:$0x77]  ;;  %v60_v13 = vld [vmem:[%s484_s3 + $0x18] sm:$0x77]  ;;  %v308_v19 = vrot.slane %v58_v8, 9 }
   0x3   :  { %v19_v3 = vld [vmem:[%s482_s1] sm:$0xff]  ;;  %51 = vperm.xlu0 %336, %v48_v2   ;;  %v67_v10 = vld [vmem:[%s484_s3 + $0x4c] sm:$0x77]  ;;  %v68_v11 = vld [vmem:[%s484_s3 + $0x54] sm:$0x77]  ;;  %v309_v20 = vrot.slane %v59_v9, 9 }
   0x4   :  { %v385_v5 = vld [vmem:[%s484_s3 + $0x3c] sm:$0x77]  ;;  %v390_v6 = vld [vmem:[%s484_s3 + $0x44] sm:$0x77]  ;;  %v63_v16 = vld [vmem:[%s484_s3 + $0x30] sm:$0x7]  ;;  %v128_v33 = vmax.f32 %v58_v8, %v308_v19 }
   0x5   :  { %306 = vmatmul.msk.f32.vlgmr.msra.gmra.mxu0 %vm21_vm0, %v19_v3  ;;  %v57_v7 = vld [vmem:[%s484_s3] sm:$0x77]  ;;  %v62_v15 = vld [vmem:[%s484_s3 + $0x28] sm:$0x77]  ;;  %v310_v21 = vrot.slane %v60_v13, 9  ;;  %v313_v24 = vrot.slane %v63_v16, 9  ;;  %v129_v34 = vmax.f32 %v59_v9, %v309_v20 }
   0x6   :  { %v69_v12 = vld [vmem:[%s484_s3 + $0x5c] sm:$0x77]  ;;  %v70_v17 = vld [vmem:[%s484_s3 + $0x64] sm:$0x7]  ;;  %v307_v18 = vrot.slane %v57_v7, 9  ;;  %v312_v23 = vrot.slane %v62_v15, 9 }
   0x7   :  { %v61_v14 = vld [vmem:[%s484_s3 + $0x20] sm:$0x77]  ;;  %v314_v25 = vrot.slane %v380_v4, 9  ;;  %v315_v26 = vrot.slane %v385_v5, 9  ;;  %v316_v27 = vrot.slane %v390_v6, 9  ;;  %v317_v28 = vrot.slane %v67_v10, 9 }
   0x8   :  { %v311_v22 = vrot.slane %v61_v14, 9  ;;  %v318_v29 = vrot.slane %v68_v11, 9  ;;  %v319_v30 = vrot.slane %v69_v12, 9  ;;  %v320_v31 = vrot.slane %v70_v17, 9 }
   0x9   :  { %v127_v32 = vmax.f32 %v57_v7, %v307_v18  ;;  %v130_v35 = vmax.f32 %v60_v13, %v310_v21  ;;  %v132_v37 = vmax.f32 %v62_v15, %v312_v23  ;;  %v133_v38 = vmax.f32 %v63_v16, %v313_v24 }
   0xa   :  { %v131_v36 = vmax.f32 %v61_v14, %v311_v22  ;;  %v134_v39 = vmax.f32 %v380_v4, %v314_v25  ;;  %v135_v40 = vmax.f32 %v385_v5, %v315_v26  ;;  %v136_v41 = vmax.f32 %v390_v6, %v316_v27 }
   0xb   :  { %v137_v42 = vmax.f32 %v67_v10, %v317_v28  ;;  %v138_v43 = vmax.f32 %v68_v11, %v318_v29  ;;  %v139_v44 = vmax.f32 %v69_v12, %v319_v30  ;;  %v140_v45 = vmax.f32 %v70_v17, %v320_v31 }
   0xc   :  { %v321_v46 = vrot.slane %v57_v7, 10  ;;  %v322_v47 = vrot.slane %v58_v8, 10  ;;  %v323_v48 = vrot.slane %v59_v9, 10  ;;  %v324_v49 = vrot.slane %v60_v13, 10 }
   0xd   :  { %v325_v50 = vrot.slane %v61_v14, 10  ;;  %v326_v51 = vrot.slane %v62_v15, 10  ;;  %v327_v52 = vrot.slane %v63_v16, 10  ;;  %v328_v53 = vrot.slane %v380_v4, 10 }
   0xe   :  { %v329_v54 = vrot.slane %v385_v5, 10  ;;  %v330_v55 = vrot.slane %v390_v6, 10  ;;  %v331_v56 = vrot.slane %v67_v10, 10  ;;  %v332_v57 = vrot.slane %v68_v11, 10 }
   0xf   :  { %v333_v58 = vrot.slane %v69_v12, 10  ;;  %v334_v59 = vrot.slane %v70_v17, 10  ;;  %v183_v60 = vmax.f32 %v127_v32, %v321_v46  ;;  %v184_v61 = vmax.f32 %v128_v33, %v322_v47 }
  0x10   :  { %v185_v62 = vmax.f32 %v129_v34, %v323_v48  ;;  %v186_v63 = vmax.f32 %v130_v35, %v324_v49  ;;  %v187_v0 = vmax.f32 %v131_v36, %v325_v50  ;;  %v188_v1 = vmax.f32 %v132_v37, %v326_v51 }
  0x11   :  { %v189_v2 = vmax.f32 %v133_v38, %v327_v52  ;;  %v190_v3 = vmax.f32 %v134_v39, %v328_v53  ;;  %v191_v7 = vmax.f32 %v135_v40, %v329_v54  ;;  %v192_v8 = vmax.f32 %v136_v41, %v330_v55 }
  0x12   :  { %v193_v9 = vmax.f32 %v137_v42, %v331_v56  ;;  %v194_v4 = vmax.f32 %v138_v43, %v332_v57  ;;  %v195_v13 = vmax.f32 %v139_v44, %v333_v58  ;;  %v196_v5 = vmax.f32 %v140_v45, %v334_v59 }
  0x13   :  { %v211_v14 = vrot.slane %v183_v60, 2  ;;  %v212_v6 = vrot.slane %v184_v61, 4  ;;  %v213_v10 = vrot.slane %v184_v61, 6  ;;  %v214_v11 = vrot.slane %v185_v62, 2 }
  0x14   :  { %v215_v12 = vrot.slane %v186_v63, 4  ;;  %v216_v15 = vrot.slane %v186_v63, 6  ;;  %v217_v16 = vrot.slane %v187_v0, 2  ;;  %v218_v17 = vrot.slane %v188_v1, 4 }
  0x15   :  { %v219_v18 = vrot.slane %v188_v1, 6  ;;  %v221_v19 = vrot.slane %v190_v3, 2  ;;  %v222_v20 = vrot.slane %v191_v7, 4  ;;  %v223_v21 = vrot.slane %v191_v7, 6 }
  0x16   :  { %v224_v22 = vrot.slane %v192_v8, 2  ;;  %v225_v23 = vrot.slane %v193_v9, 4  ;;  %v226_v24 = vrot.slane %v193_v9, 6  ;;  %v227_v25 = vrot.slane %v194_v4, 2 }
  0x17   :  { %v228_v26 = vrot.slane %v195_v13, 4  ;;  %v229_v27 = vrot.slane %v195_v13, 6  ;;  %v230_v28 = vrot.slane %v196_v5, 2  ;;  %v232_v29 = vsel %vm231_vm1, %v183_v60, %v211_v14 }
  0x18   :  { %v237_v30 = vsel %vm231_vm1, %v185_v62, %v214_v11  ;;  %v234_v31 = vsel %vm233_vm2, %v212_v6, %v213_v10  ;;  %v238_v32 = vsel %vm233_vm2, %v215_v12, %v216_v15  ;;  %v240_v33 = vsel %vm231_vm1, %v187_v0, %v217_v16 }
  0x19   :  { %v241_v34 = vsel %vm233_vm2, %v218_v17, %v219_v18  ;;  %v220_v35 = vrot.slane %v189_v2, 2  ;;  %v236_v36 = vsel %vm235_vm3, %v232_v29, %v234_v31  ;;  %v239_v37 = vsel %vm235_vm3, %v237_v30, %v238_v32 }
  0x1a   :  { %v242_v38 = vsel %vm235_vm3, %v240_v33, %v241_v34  ;;  %v244_v39 = vsel %vm231_vm1, %v190_v3, %v221_v19  ;;  %v245_v40 = vsel %vm233_vm2, %v222_v20, %v223_v21  ;;  %v247_v41 = vsel %vm231_vm1, %v192_v8, %v224_v22 }
  0x1b   :  { %v248_v42 = vsel %vm233_vm2, %v225_v23, %v226_v24  ;;  %v246_v43 = vsel %vm235_vm3, %v244_v39, %v245_v40  ;;  %v250_v45 = vsel %vm231_vm1, %v194_v4, %v227_v25  ;;  %v251_v46 = vsel %vm233_vm2, %v228_v26, %v229_v27 }
  0x1c   :  { %v249_v44 = vsel %vm235_vm3, %v247_v41, %v248_v42  ;;  %v252_v47 = vsel %vm235_vm3, %v250_v45, %v251_v46  ;;  %v253_v48 = vsel %vm231_vm1, %v196_v5, %v230_v28  ;;  %v258_v49 = vrot.slane %v246_v43, 7 }
  0x1d   :  { %vm259_vm4 = vcmask 1041409   ;;  %v243_v50 = vsel %vm231_vm1, %v189_v2, %v220_v35  ;;  %vm261_vm5 = vcmask 1043459   ;;  %vm263_vm6 = vcmask 1045509  }
  0x1e   :  { %v269_v51 = vrot.slane %v249_v44, 7  ;;  %v260_v52 = vsel %vm259_vm4, %v258_v49, %v236_v36  ;;  %vm265_vm7 = vcmask 1047559   ;;  %v276_v53 = vrot.slane %v252_v47, 7 }
  0x1f   :  { %v283_v54 = vrot.slane %v253_v48, 7  ;;  %v262_v55 = vsel %vm261_vm5, %v258_v49, %v260_v52  ;;  %vm295_vm8 = vcmask 254976   ;;  %vm55_vm9 = vcmask 64512  }
  0x20   :  { %v270_v56 = vsel %vm259_vm4, %v269_v51, %v239_v37  ;;  %v264_v57 = vsel %vm263_vm6, %v258_v49, %v262_v55  ;;  %v277_v59 = vsel %vm259_vm4, %v276_v53, %v242_v38 }
  0x21   :  { %v271_v58 = vsel %vm261_vm5, %v269_v51, %v270_v56  ;;  %v284_v60 = vsel %vm259_vm4, %v283_v54, %v243_v50  ;;  %v266_v61 = vsel %vm265_vm7, %v258_v49, %v264_v57  ;;  %v278_v63 = vsel %vm261_vm5, %v276_v53, %v277_v59 }
  0x22   :  { %v272_v62 = vsel %vm263_vm6, %v269_v51, %v271_v58  ;;  %v285_v0 = vsel %vm261_vm5, %v283_v54, %v284_v60  ;;  %v279_v2 = vsel %vm263_vm6, %v276_v53, %v278_v63  ;;  %292 = vst [vmem:[%s485_s5] sm:$0xff] %v266_v61 }
  0x23   :  { %v273_v1 = vsel %vm265_vm7, %v269_v51, %v272_v62  ;;  %v286_v3 = vsel %vm263_vm6, %v283_v54, %v285_v0  ;;  %v280_v7 = vsel %vm265_vm7, %v276_v53, %v279_v2 }
  0x24   :  { %v287_v8 = vsel %vm265_vm7, %v283_v54, %v286_v3  ;;  %293 = vst [vmem:[%s485_s5 + $0x8] sm:$0xff] %v273_v1 }
  0x25   :  { %294 = vst [vmem:[%s485_s5 + $0x10] sm:$0xff] %v280_v7 }
  0x26   :  { %296 = vst.msk [vmem:[%s485_s5 + $0x18] sm:$0x3] %vm295_vm8, %v287_v8 }
  0x75   :  { %v52_v9 = vpop.permute.xlu0 %51 }
  0x82   :  { %v45_v4 = vpop.f32.mrf.mxu0 }
  0x83   :  { %v54_v13 = vmul.f32 %v52_v9, %v45_v4 }
  0x85   :  { %56 = vst.msk [vmem:[%s486_s4] sm:$0xff] %vm55_vm9, %v54_v13 }

</bundles_post_ra>
